<compile_context>
chip_gen: v6e
topology: v6e:2x2x1
jax: 0.10.0
libtpu: 0.0.40
codegen_flags: <defaults>
</compile_context>

<pallas_src>
import jax
import jax.numpy as jnp
from jax.experimental import pallas as pl
from jax.experimental.pallas import tpu as pltpu

OUT_LANES = 128  # pad final output width to a multiple of this (lane-dense store)


def complex_ann_kernel(x_ref, w1_ref, b1_ref, w2_ref, b2_ref, w3_ref, b3_ref,
                       w4_ref, b4_ref, o_ref):
    # Entire hot path (4 matmuls + biases + ReLUs) fused in VMEM.
    # bf16 operands feed the MXU; accumulation and ReLU are f32.
    h = x_ref[...]  # bf16 (tb, in)

    h = jnp.dot(h, w1_ref[...], preferred_element_type=jnp.float32) + b1_ref[...]
    h = jnp.maximum(h, 0.0).astype(jnp.bfloat16)
    # TODO(synk): nn.Dropout(p=0.5) omitted -- eval-mode forward (dropout == identity).

    h = jnp.dot(h, w2_ref[...], preferred_element_type=jnp.float32) + b2_ref[...]
    h = jnp.maximum(h, 0.0).astype(jnp.bfloat16)

    h = jnp.dot(h, w3_ref[...], preferred_element_type=jnp.float32) + b3_ref[...]
    h = jnp.maximum(h, 0.0).astype(jnp.bfloat16)

    out = jnp.dot(h, w4_ref[...], preferred_element_type=jnp.float32) + b4_ref[...]
    o_ref[...] = out.astype(o_ref.dtype)


def complex_ann_forward(x, params, *, tb=None):
    """x: (B, in_features) float32. params: w1..w4 (fan_in, fan_out), b1..b4 (1, fan_out)."""
    B, in_features = x.shape
    d1 = params["w1"].shape[1]
    d2 = params["w2"].shape[1]
    d3 = params["w3"].shape[1]
    out_features = params["w4"].shape[1]

    # --- batch tiling: single step for tiny batches, 256-row tiles otherwise ---
    if tb is None:
        tb = min(256, B)
    tb = max(8, ((tb + 7) // 8) * 8)          # sublane multiple
    B_pad = pl.cdiv(B, tb) * tb
    if B_pad != B:
        x = jnp.pad(x, ((0, B_pad - B), (0, 0)))

    # --- lane-dense final layer: pad out_features up to a multiple of 128 ---
    lane_pad = (-out_features) % OUT_LANES
    out_padded = out_features + lane_pad
    w4 = jnp.pad(params["w4"], ((0, 0), (0, lane_pad)))
    b4 = jnp.pad(params["b4"], ((0, 0), (0, lane_pad)))

    # --- bf16 MXU operands (weights + x); biases stay f32 ---
    x_bf16 = x.astype(jnp.bfloat16)
    w1 = params["w1"].astype(jnp.bfloat16)
    w2 = params["w2"].astype(jnp.bfloat16)
    w3 = params["w3"].astype(jnp.bfloat16)
    w4 = w4.astype(jnp.bfloat16)
    b1, b2, b3 = params["b1"], params["b2"], params["b3"]

    grid = (B_pad // tb,)
    out = pl.pallas_call(
        complex_ann_kernel,
        out_shape=jax.ShapeDtypeStruct((B_pad, out_padded), jnp.float32),
        grid_spec=pltpu.PrefetchScalarGridSpec(
            num_scalar_prefetch=0,
            grid=grid,
            in_specs=[
                # batch-tiled activations; weights/biases are grid-invariant full blocks
                pl.BlockSpec((tb, in_features), lambda i: (i, 0)),
                pl.BlockSpec((in_features, d1), lambda i: (0, 0)),
                pl.BlockSpec((1, d1), lambda i: (0, 0)),
                pl.BlockSpec((d1, d2), lambda i: (0, 0)),
                pl.BlockSpec((1, d2), lambda i: (0, 0)),
                pl.BlockSpec((d2, d3), lambda i: (0, 0)),
                pl.BlockSpec((1, d3), lambda i: (0, 0)),
                pl.BlockSpec((d3, out_padded), lambda i: (0, 0)),
                pl.BlockSpec((1, out_padded), lambda i: (0, 0)),
            ],
            out_specs=pl.BlockSpec((tb, out_padded), lambda i: (i, 0)),
        ),
        compiler_params=pltpu.CompilerParams(
            dimension_semantics=("parallel",),
        ),
    )(x_bf16, w1, b1, w2, b2, w3, b3, w4, b4)

    return out[:B, :out_features]


def init_params(key, in_features, layers=(512, 256, 128), out_features=2):
    """Deterministic PyTorch-style (uniform +/- 1/sqrt(fan_in)) init, weights (fan_in, fan_out)."""
    dims = [in_features, *layers, out_features]
    ks = jax.random.split(key, 2 * (len(dims) - 1))
    params = {}
    for li in range(len(dims) - 1):
        fan_in, fan_out = dims[li], dims[li + 1]
        bound = 1.0 / jnp.sqrt(fan_in)
        kw, kb = ks[2 * li], ks[2 * li + 1]
        params[f"w{li + 1}"] = jax.random.uniform(kw, (fan_in, fan_out), jnp.float32, -bound, bound)
        params[f"b{li + 1}"] = jax.random.uniform(kb, (1, fan_out), jnp.float32, -bound, bound)
    return params


def reference_forward(x, p):
    """Mirrors the kernel math exactly: bf16 operands, f32 accumulation, f32 ReLU."""
    def lin(h, w, b):
        return jnp.dot(h.astype(jnp.bfloat16), w.astype(jnp.bfloat16),
                       preferred_element_type=jnp.float32) + b
    h = jnp.maximum(lin(x, p["w1"], p["b1"]), 0.0)
    h = jnp.maximum(lin(h, p["w2"], p["b2"]), 0.0)
    h = jnp.maximum(lin(h, p["w3"], p["b3"]), 0.0)
    return lin(h, p["w4"], p["b4"])


if __name__ == "__main__":
    key = jax.random.PRNGKey(0)
    k_x, k_p = jax.random.split(key)

    B, in_features = 8, 64
    x = jax.random.normal(k_x, (B, in_features), jnp.float32)
    params = init_params(k_p, in_features, layers=(512, 256, 128), out_features=2)

    out = complex_ann_forward(x, params)
    out = jax.block_until_ready(out)

    ref = reference_forward(x, params)
    assert out.shape == (B, 2), out.shape
    assert jnp.allclose(out, ref, atol=1e-3, rtol=1e-3), float(jnp.max(jnp.abs(out - ref)))

    print("KERNEL_OK")
</pallas_src>

<mosaic_0001>
module attributes {stable_mosaic.version = 11 : i64} {
  func.func @complex_ann_kernel(%arg0: i32, %arg1: memref<8x64xbf16, #tpu.memory_space<vmem>>, %arg2: memref<64x512xbf16, #tpu.memory_space<vmem>>, %arg3: memref<1x512xf32, #tpu.memory_space<vmem>>, %arg4: memref<512x256xbf16, #tpu.memory_space<vmem>>, %arg5: memref<1x256xf32, #tpu.memory_space<vmem>>, %arg6: memref<256x128xbf16, #tpu.memory_space<vmem>>, %arg7: memref<1x128xf32, #tpu.memory_space<vmem>>, %arg8: memref<128x128xbf16, #tpu.memory_space<vmem>>, %arg9: memref<1x128xf32, #tpu.memory_space<vmem>>, %arg10: memref<8x128xf32, #tpu.memory_space<vmem>>) attributes {dimension_semantics = [#tpu.dimension_semantics<parallel>], iteration_bounds = array<i64: 1>, scalar_prefetch = 0 : i64, scratch_operands = 0 : i64, tpu.core_type = #tpu.core_type<tc>, window_params = [{transform_indices = @transform_0, window_bounds = array<i64: 8, 64>}, {pipeline_mode = #tpu.pipeline_mode<synchronous>, transform_indices = @transform_1, window_bounds = array<i64: 64, 512>}, {pipeline_mode = #tpu.pipeline_mode<synchronous>, transform_indices = @transform_2, window_bounds = array<i64: 1, 512>}, {pipeline_mode = #tpu.pipeline_mode<synchronous>, transform_indices = @transform_3, window_bounds = array<i64: 512, 256>}, {pipeline_mode = #tpu.pipeline_mode<synchronous>, transform_indices = @transform_4, window_bounds = array<i64: 1, 256>}, {pipeline_mode = #tpu.pipeline_mode<synchronous>, transform_indices = @transform_5, window_bounds = array<i64: 256, 128>}, {pipeline_mode = #tpu.pipeline_mode<synchronous>, transform_indices = @transform_6, window_bounds = array<i64: 1, 128>}, {pipeline_mode = #tpu.pipeline_mode<synchronous>, transform_indices = @transform_7, window_bounds = array<i64: 128, 128>}, {pipeline_mode = #tpu.pipeline_mode<synchronous>, transform_indices = @transform_8, window_bounds = array<i64: 1, 128>}, {transform_indices = @transform_9, window_bounds = array<i64: 8, 128>}]} {
    %c0 = arith.constant 0 : index
    %c0_0 = arith.constant 0 : index
    %0 = vector.load %arg1[%c0, %c0_0] : memref<8x64xbf16, #tpu.memory_space<vmem>>, vector<8x64xbf16>
    %c0_1 = arith.constant 0 : index
    %c0_2 = arith.constant 0 : index
    %1 = vector.load %arg2[%c0_1, %c0_2] : memref<64x512xbf16, #tpu.memory_space<vmem>>, vector<64x512xbf16>
    %cst = arith.constant dense<0.000000e+00> : vector<8x512xf32>
    %2 = tpu.matmul %0, %1, %cst {dimension_numbers = #tpu.dot_dimension_numbers<[1], [0], [0], [1], [0, 0, 1, 1], [], []>} : vector<8x64xbf16>, vector<64x512xbf16>, vector<8x512xf32> -> vector<8x512xf32>
    %c0_3 = arith.constant 0 : index
    %c0_4 = arith.constant 0 : index
    %3 = vector.load %arg3[%c0_3, %c0_4] : memref<1x512xf32, #tpu.memory_space<vmem>>, vector<1x512xf32>
    %4 = vector.broadcast %3 : vector<1x512xf32> to vector<8x512xf32>
    %5 = arith.addf %2, %4 : vector<8x512xf32>
    %cst_5 = arith.constant 0.000000e+00 : f32
    %6 = vector.broadcast %cst_5 : f32 to vector<8x512xf32>
    %7 = arith.maximumf %5, %6 : vector<8x512xf32>
    %8 = arith.truncf %7 : vector<8x512xf32> to vector<8x512xbf16>
    %c0_6 = arith.constant 0 : index
    %c0_7 = arith.constant 0 : index
    %9 = vector.load %arg4[%c0_6, %c0_7] : memref<512x256xbf16, #tpu.memory_space<vmem>>, vector<512x256xbf16>
    %cst_8 = arith.constant dense<0.000000e+00> : vector<8x256xf32>
    %10 = tpu.matmul %8, %9, %cst_8 {dimension_numbers = #tpu.dot_dimension_numbers<[1], [0], [0], [1], [0, 0, 1, 1], [], []>} : vector<8x512xbf16>, vector<512x256xbf16>, vector<8x256xf32> -> vector<8x256xf32>
    %c0_9 = arith.constant 0 : index
    %c0_10 = arith.constant 0 : index
    %11 = vector.load %arg5[%c0_9, %c0_10] : memref<1x256xf32, #tpu.memory_space<vmem>>, vector<1x256xf32>
    %12 = vector.broadcast %11 : vector<1x256xf32> to vector<8x256xf32>
    %13 = arith.addf %10, %12 : vector<8x256xf32>
    %cst_11 = arith.constant 0.000000e+00 : f32
    %14 = vector.broadcast %cst_11 : f32 to vector<8x256xf32>
    %15 = arith.maximumf %13, %14 : vector<8x256xf32>
    %16 = arith.truncf %15 : vector<8x256xf32> to vector<8x256xbf16>
    %c0_12 = arith.constant 0 : index
    %c0_13 = arith.constant 0 : index
    %17 = vector.load %arg6[%c0_12, %c0_13] : memref<256x128xbf16, #tpu.memory_space<vmem>>, vector<256x128xbf16>
    %cst_14 = arith.constant dense<0.000000e+00> : vector<8x128xf32>
    %18 = tpu.matmul %16, %17, %cst_14 {dimension_numbers = #tpu.dot_dimension_numbers<[1], [0], [0], [1], [0, 0, 1, 1], [], []>} : vector<8x256xbf16>, vector<256x128xbf16>, vector<8x128xf32> -> vector<8x128xf32>
    %c0_15 = arith.constant 0 : index
    %c0_16 = arith.constant 0 : index
    %19 = vector.load %arg7[%c0_15, %c0_16] : memref<1x128xf32, #tpu.memory_space<vmem>>, vector<1x128xf32>
    %20 = vector.broadcast %19 : vector<1x128xf32> to vector<8x128xf32>
    %21 = arith.addf %18, %20 : vector<8x128xf32>
    %cst_17 = arith.constant 0.000000e+00 : f32
    %22 = vector.broadcast %cst_17 : f32 to vector<8x128xf32>
    %23 = arith.maximumf %21, %22 : vector<8x128xf32>
    %24 = arith.truncf %23 : vector<8x128xf32> to vector<8x128xbf16>
    %c0_18 = arith.constant 0 : index
    %c0_19 = arith.constant 0 : index
    %25 = vector.load %arg8[%c0_18, %c0_19] : memref<128x128xbf16, #tpu.memory_space<vmem>>, vector<128x128xbf16>
    %cst_20 = arith.constant dense<0.000000e+00> : vector<8x128xf32>
    %26 = tpu.matmul %24, %25, %cst_20 {dimension_numbers = #tpu.dot_dimension_numbers<[1], [0], [0], [1], [0, 0, 1, 1], [], []>} : vector<8x128xbf16>, vector<128x128xbf16>, vector<8x128xf32> -> vector<8x128xf32>
    %c0_21 = arith.constant 0 : index
    %c0_22 = arith.constant 0 : index
    %27 = vector.load %arg9[%c0_21, %c0_22] : memref<1x128xf32, #tpu.memory_space<vmem>>, vector<1x128xf32>
    %28 = vector.broadcast %27 : vector<1x128xf32> to vector<8x128xf32>
    %29 = arith.addf %26, %28 : vector<8x128xf32>
    %c0_23 = arith.constant 0 : index
    %c0_24 = arith.constant 0 : index
    %30 = vector.load %arg10[%c0_23, %c0_24] : memref<8x128xf32, #tpu.memory_space<vmem>>, vector<8x128xf32>
    tpu.vector_store %arg10[%c0_23, %c0_24], %29 {strides = array<i32>} : memref<8x128xf32, #tpu.memory_space<vmem>>, vector<8x128xf32>,
    return
  }
  func.func @transform_0(%arg0: i32) -> (i32, i32) {
    %c0_i32 = arith.constant 0 : i32
    %c0_i32_0 = arith.constant 0 : i32
    return %arg0, %c0_i32 : i32, i32
  }
  func.func @transform_1(%arg0: i32) -> (i32, i32) {
    %c0_i32 = arith.constant 0 : i32
    %c0_i32_0 = arith.constant 0 : i32
    %c0_i32_1 = arith.constant 0 : i32
    return %c0_i32, %c0_i32_0 : i32, i32
  }
  func.func @transform_2(%arg0: i32) -> (i32, i32) {
    %c0_i32 = arith.constant 0 : i32
    %c0_i32_0 = arith.constant 0 : i32
    %c0_i32_1 = arith.constant 0 : i32
    return %c0_i32, %c0_i32_0 : i32, i32
  }
  func.func @transform_3(%arg0: i32) -> (i32, i32) {
    %c0_i32 = arith.constant 0 : i32
    %c0_i32_0 = arith.constant 0 : i32
    %c0_i32_1 = arith.constant 0 : i32
    return %c0_i32, %c0_i32_0 : i32, i32
  }
  func.func @transform_4(%arg0: i32) -> (i32, i32) {
    %c0_i32 = arith.constant 0 : i32
    %c0_i32_0 = arith.constant 0 : i32
    %c0_i32_1 = arith.constant 0 : i32
    return %c0_i32, %c0_i32_0 : i32, i32
  }
  func.func @transform_5(%arg0: i32) -> (i32, i32) {
    %c0_i32 = arith.constant 0 : i32
    %c0_i32_0 = arith.constant 0 : i32
    %c0_i32_1 = arith.constant 0 : i32
    return %c0_i32, %c0_i32_0 : i32, i32
  }
  func.func @transform_6(%arg0: i32) -> (i32, i32) {
    %c0_i32 = arith.constant 0 : i32
    %c0_i32_0 = arith.constant 0 : i32
    %c0_i32_1 = arith.constant 0 : i32
    return %c0_i32, %c0_i32_0 : i32, i32
  }
  func.func @transform_7(%arg0: i32) -> (i32, i32) {
    %c0_i32 = arith.constant 0 : i32
    %c0_i32_0 = arith.constant 0 : i32
    %c0_i32_1 = arith.constant 0 : i32
    return %c0_i32, %c0_i32_0 : i32, i32
  }
  func.func @transform_8(%arg0: i32) -> (i32, i32) {
    %c0_i32 = arith.constant 0 : i32
    %c0_i32_0 = arith.constant 0 : i32
    %c0_i32_1 = arith.constant 0 : i32
    return %c0_i32, %c0_i32_0 : i32, i32
  }
  func.func @transform_9(%arg0: i32) -> (i32, i32) {
    %c0_i32 = arith.constant 0 : i32
    %c0_i32_0 = arith.constant 0 : i32
    return %arg0, %c0_i32 : i32, i32
  }
}

</mosaic_0001>

<bundles_post_ra>
// kernel: tpu_custom_call.1
= control target key start
LH: loop header
LB: loop body
LE: loop exit
PB: predicated region body
PF: predicated region fallthrough
CT: control target
= control target key end

     0   :  { %14 = vsyncpa [#allocation3], 0  ;;  %s1693_s0 = inlined_call_operand.hbm [shape: bf16[8,64], index: 0, kind: input, shape index: {}]   ;;  %s1694_s1 = inlined_call_operand.hbm [shape: bf16[64,512], index: 1, kind: input, shape index: {}]   ;;  %s1695_s2 = inlined_call_operand.hbm [shape: f32[1,512], index: 2, kind: input, shape index: {}]   ;;  %s1696_s3 = inlined_call_operand.hbm [shape: bf16[512,256], index: 3, kind: input, shape index: {}]   ;;  %s1697_s4 = inlined_call_operand.vmem [shape: f32[1,256], index: 4, kind: input, shape index: {}]   ;;  %s1698_s5 = inlined_call_operand.hbm [shape: bf16[256,128], index: 5, kind: input, shape index: {}]   ;;  %s1699_s6 = inlined_call_operand.vmem [shape: f32[1,128], index: 6, kind: input, shape index: {}]   ;;  %s1700_s7 = inlined_call_operand.hbm [shape: bf16[128,128], index: 7, kind: input, shape index: {}]   ;;  %s1701_s8 = inlined_call_operand.vmem [shape: f32[1,128], index: 8, kind: input, shape index: {}]   ;;  %s1702_s9 = inlined_call_operand.hbm [shape: f32[8,128], index: 9, kind: output, shape index: {}]  }
   0x1   :  { %15 = vsyncpa [#allocation6], 0 }
   0x2   :  { %16 = vsyncpa [#allocation9], 0 }
   0x3   :  { %17 = vsyncpa [#allocation12], 0 }
   0x4   :  { %18 = vsyncpa [#allocation4], 0  ;;  %s1583_s30 = smov [#allocation5]  }
   0x5   :  { %s34_s10 = sshll.u32 %s1583_s30, 4  ;;  %s35_s10 = int_to_ptr.vmem [resolvable:$true] %s34_s10 }
   0x6   :  { %s1441_s11 = scalar_lea.vmem %s35_s10, 2048  ;;  %p1446_p1 = scmp.lt.s32.totalorder %s35_s10, %s35_s10 }
   0x7   :  { %p1442_p0 = scmp.ne.s32.totalorder %s35_s10, %s1441_s11  ;;  %p1447_p2 = scmp.lt.s32.totalorder %s1441_s11, %s1441_s11 }
   0x9   :  { %p1448_p3 = por %p1447_p2, %p1446_p1 }
   0xb   :  { %p1449_p4 = pnand %p1448_p3, %p1442_p0 }
   0xd   :  { %1452 = shalt.err (!%p1449_p4)
}
   0xe   :  { %s1584_s12 = smov 256   ;;  %s1585_s13 = smov 16  }
   0xf   :  { %40 = dma.hbm_to_vmem [thread:$0]  %s1694_s1, 2048, %s35_s10, [#allocation6], %s1584_s12, %s1584_s12, %s1585_s13  }
  0x10   :  { %s1586_s16 = smov [#allocation8]  }
  0x11   :  { %s56_s17 = sshll.u32 %s1586_s16, 4  ;;  %s57_s17 = int_to_ptr.vmem [resolvable:$true] %s56_s17 }
  0x12   :  { %s1461_s18 = scalar_lea.vmem %s57_s17, 8192  ;;  %p1466_p6 = scmp.lt.s32.totalorder %s57_s17, %s57_s17 }
  0x13   :  { %p1462_p5 = scmp.ne.s32.totalorder %s57_s17, %s1461_s18  ;;  %p1467_p7 = scmp.lt.s32.totalorder %s1461_s18, %s1461_s18 }
  0x15   :  { %p1468_p8 = por %p1467_p7, %p1466_p6 }
  0x17   :  { %p1469_p9 = pnand %p1468_p8, %p1462_p5 }
  0x19   :  { %1472 = shalt.err (!%p1469_p9)
}
  0x1a   :  { %s1587_s19 = smov 128   ;;  %s1588_s20 = smov 8  }
  0x1b   :  { %62 = dma.hbm_to_vmem [thread:$0]  %s1696_s3, 8192, %s57_s17, [#allocation9], %s1587_s19, %s1587_s19, %s1588_s20  }
  0x1c   :  { %s1589_s23 = smov [#allocation2]   ;;  %s1590_s25 = smov [#allocation7]  }
  0x1d   :  { %s25_s24 = sshll.u32 %s1589_s23, 4  ;;  %s47_s1 = sshll.u32 %s1590_s25, 4  ;;  %s26_s24 = int_to_ptr.vmem [resolvable:$true] %s25_s24  ;;  %s48_s1 = int_to_ptr.vmem [resolvable:$true] %s47_s1 }
  0x1e   :  { %s1481_s26 = scalar_lea.vmem %s26_s24, 64  ;;  %p1486_p11 = scmp.lt.s32.totalorder %s26_s24, %s26_s24 }
  0x1f   :  { %p1482_p10 = scmp.ne.s32.totalorder %s26_s24, %s1481_s26  ;;  %p1487_p12 = scmp.lt.s32.totalorder %s1481_s26, %s1481_s26 }
  0x21   :  { %p1488_p13 = por %p1487_p12, %p1486_p11 }
  0x23   :  { %p1489_p0 = pnand %p1488_p13, %p1482_p10 }
  0x25   :  { %1492 = shalt.err (!%p1489_p0)
}
  0x26   :  { %28 = dma.hbm_to_vmem [thread:$0]  %s1693_s0, 64, %s26_s24, [#allocation3]  }
  0x27   :  { %s1501_s29 = scalar_lea.vmem %s48_s1, 64  ;;  %p1506_p2 = scmp.lt.s32.totalorder %s48_s1, %s48_s1 }
  0x28   :  { %p1502_p1 = scmp.ne.s32.totalorder %s48_s1, %s1501_s29  ;;  %p1507_p3 = scmp.lt.s32.totalorder %s1501_s29, %s1501_s29 }
  0x2a   :  { %p1508_p4 = por %p1507_p3, %p1506_p2 }
  0x2c   :  { %p1509_p5 = pnand %p1508_p4, %p1502_p1 }
  0x2e   :  { %1512 = shalt.err (!%p1509_p5)
}
  0x2f   :  { %50 = dma.hbm_to_vmem [thread:$0]  %s1695_s2, 64, %s48_s1, [#allocation6]  }
  0x30   :  { %s1591_s10 = smov [#allocation10]  }
  0x31   :  { %s70_s11 = sshll.u32 %s1591_s10, 4  ;;  %s71_s11 = int_to_ptr.vmem [resolvable:$true] %s70_s11 }
  0x32   :  { %s1521_s12 = scalar_lea.vmem %s71_s11, 2048  ;;  %p1526_p7 = scmp.lt.s32.totalorder %s71_s11, %s71_s11 }
  0x33   :  { %p1522_p6 = scmp.ne.s32.totalorder %s71_s11, %s1521_s12  ;;  %p1527_p8 = scmp.lt.s32.totalorder %s1521_s12, %s1521_s12 }
  0x35   :  { %p1528_p9 = por %p1527_p8, %p1526_p7 }
  0x37   :  { %p1529_p10 = pnand %p1528_p9, %p1522_p6 }
  0x39   :  { %1532 = shalt.err (!%p1529_p10)
}
  0x3a   :  { %s1592_s0 = smov 64   ;;  %s1593_s13 = smov 4  }
  0x3b   :  { %76 = dma.hbm_to_vmem [thread:$0]  %s1698_s5, 2048, %s71_s11, [#allocation9], %s1592_s0, %s1592_s0, %s1593_s13  }
  0x3c   :  { %s1594_s16 = smov [#allocation11]  }
  0x3d   :  { %s84_s17 = sshll.u32 %s1594_s16, 4  ;;  %s85_s17 = int_to_ptr.vmem [resolvable:$true] %s84_s17 }
  0x3e   :  { %s1541_s2 = scalar_lea.vmem %s85_s17, 1024  ;;  %p1546_p12 = scmp.lt.s32.totalorder %s85_s17, %s85_s17 }
  0x3f   :  { %p1542_p11 = scmp.ne.s32.totalorder %s85_s17, %s1541_s2  ;;  %p1547_p13 = scmp.lt.s32.totalorder %s1541_s2, %s1541_s2 }
  0x41   :  { %p1548_p0 = por %p1547_p13, %p1546_p12 }
  0x43   :  { %p1549_p1 = pnand %p1548_p0, %p1542_p11 }
  0x45   :  { %1552 = shalt.err (!%p1549_p1)
}
  0x46   :  { %90 = dma.hbm_to_vmem [thread:$0]  %s1700_s7, 1024, %s85_s17, [#allocation12], %s1592_s0, %s1592_s0, %s1593_s13  }
  0x47   :  { %1573 = dma.done.wait [#allocation3], 64  }
  0x48   :  { %1574 = vsyncadd [#allocation3], 4294967232 }
  0x49   :  { %1575 = dma.done.wait [#allocation6], 2112  }
  0x4a   :  { %1576 = vsyncadd [#allocation6], 4294965184 }
  0x4b   :  { %1577 = dma.done.wait [#allocation9], 10240  }
  0x4c   :  { %1578 = vsyncadd [#allocation9], 4294957056 }
  0x4d   :  { %1579 = dma.done.wait [#allocation12], 1024  }
  0x4e   :  { %1580 = vsyncadd [#allocation12], 4294966272  ;;  %v1595_v0 = vmov 0   ;;  %v1289_v1 = vld [vmem:[#allocation5 + $0x64] ss:$16 sps:$4 sm:$0xff]   ;;  %vm231_vm0 = vcmask 523264  }
  0x4f   :  { %267 = vmatprep.mubr.bf16.mxu0 %v1595_v0  ;;  %308 = vmatprep.mubr.bf16.mxu1 %v1595_v0  ;;  %v1291_v2 = vld [vmem:[#allocation5 + $0x6c] ss:$16 sps:$4 sm:$0xff]   ;;  %v1293_v3 = vld [vmem:[#allocation5 + $0x60] ss:$16 sps:$4 sm:$0xff]   ;;  %v1294_v4 = vld [vmem:[#allocation5 + $0x68] ss:$16 sps:$4 sm:$0xff]  }
  0x50   :  { %243 = vmatprep.subr.bf16.mxu0 %v1289_v1  ;;  %284 = vmatprep.subr.bf16.mxu1 %v1291_v2  ;;  %v1295_v5 = vld [vmem:[#allocation5 + $0x44] ss:$16 sps:$4 sm:$0xff]   ;;  %v1297_v6 = vld [vmem:[#allocation5 + $0x4c] ss:$16 sps:$4 sm:$0xff]   ;;  %v1299_v7 = vld [vmem:[#allocation5 + $0x40] ss:$16 sps:$4 sm:$0xff]  }
  0x51   :  { %244 = vmatpush1.bf16.msra.mxu0 %v1293_v3  ;;  %285 = vmatpush1.bf16.msra.mxu1 %v1294_v4  ;;  %v1300_v8 = vld [vmem:[#allocation5 + $0x48] ss:$16 sps:$4 sm:$0xff]   ;;  %v1301_v9 = vld [vmem:[#allocation5 + $0x24] ss:$16 sps:$4 sm:$0xff]   ;;  %v1303_v10 = vld [vmem:[#allocation5 + $0x2c] ss:$16 sps:$4 sm:$0xff]  }
  0x52   :  { %245 = vmatprep.subr.bf16.mxu0 %v1295_v5  ;;  %286 = vmatprep.subr.bf16.mxu1 %v1297_v6  ;;  %v1305_v11 = vld [vmem:[#allocation5 + $0x20] ss:$16 sps:$4 sm:$0xff]   ;;  %v1306_v12 = vld [vmem:[#allocation5 + $0x28] ss:$16 sps:$4 sm:$0xff]   ;;  %v1307_v13 = vld [vmem:[#allocation5 + $0x4] ss:$16 sps:$4 sm:$0xff]  }
  0x53   :  { %v1309_v14 = vld [vmem:[#allocation5 + $0xc] ss:$16 sps:$4 sm:$0xff]   ;;  %v1311_v15 = vld [vmem:[#allocation5] ss:$16 sps:$4 sm:$0xff]   ;;  %v1312_v16 = vld [vmem:[#allocation5 + $0x8] ss:$16 sps:$4 sm:$0xff]  }
  0x54   :  { %v1315_v17 = vld [vmem:[#allocation8 + $0x74] ss:$8 sps:$4 sm:$0xff]   ;;  %v112_v19 = vld [vmem:[#allocation2] sm:$0xf]  ;;  %v1321_v22 = vld [vmem:[#allocation8 + $0x64] ss:$8 sps:$4 sm:$0xff]  }
  0x55   :  { %246 = vmatpush1.bf16.msra.mxu0 %v1299_v7  ;;  %287 = vmatpush1.bf16.msra.mxu1 %v1300_v8  ;;  %v1318_v18 = vld [vmem:[#allocation8 + $0x174] ss:$8 sps:$4 sm:$0xff]   ;;  %v1313_v20 = vld [vmem:[#allocation8 + $0x70] ss:$8 sps:$4 sm:$0xff]   ;;  %v1324_v23 = vld [vmem:[#allocation8 + $0x164] ss:$8 sps:$4 sm:$0xff]  }
  0x56   :  { %247 = vmatprep.subr.bf16.mxu0 %v1301_v9  ;;  %288 = vmatprep.subr.bf16.mxu1 %v1303_v10  ;;  %v1316_v21 = vld [vmem:[#allocation8 + $0x170] ss:$8 sps:$4 sm:$0xff]   ;;  %v1319_v24 = vld [vmem:[#allocation8 + $0x60] ss:$8 sps:$4 sm:$0xff]   ;;  %v1327_v26 = vld [vmem:[#allocation8 + $0x54] ss:$8 sps:$4 sm:$0xff]  }
  0x57   :  { %v1322_v25 = vld [vmem:[#allocation8 + $0x160] ss:$8 sps:$4 sm:$0xff]   ;;  %v1330_v27 = vld [vmem:[#allocation8 + $0x154] ss:$8 sps:$4 sm:$0xff]   ;;  %v1325_v28 = vld [vmem:[#allocation8 + $0x50] ss:$8 sps:$4 sm:$0xff]  }
  0x58   :  { %v1328_v29 = vld [vmem:[#allocation8 + $0x150] ss:$8 sps:$4 sm:$0xff]   ;;  %v1333_v30 = vld [vmem:[#allocation8 + $0x44] ss:$8 sps:$4 sm:$0xff]   ;;  %v1331_v32 = vld [vmem:[#allocation8 + $0x40] ss:$8 sps:$4 sm:$0xff]  }
  0x59   :  { %248 = vmatpush1.bf16.msra.mxu0 %v1305_v11  ;;  %289 = vmatpush1.bf16.msra.mxu1 %v1306_v12  ;;  %v1336_v31 = vld [vmem:[#allocation8 + $0x144] ss:$8 sps:$4 sm:$0xff]   ;;  %v1334_v33 = vld [vmem:[#allocation8 + $0x140] ss:$8 sps:$4 sm:$0xff]   ;;  %v1339_v34 = vld [vmem:[#allocation8 + $0x34] ss:$8 sps:$4 sm:$0xff]  }
  0x5a   :  { %249 = vmatprep.subr.bf16.mxu0 %v1307_v13  ;;  %290 = vmatprep.subr.bf16.mxu1 %v1309_v14  ;;  %v1342_v35 = vld [vmem:[#allocation8 + $0x134] ss:$8 sps:$4 sm:$0xff]   ;;  %v1337_v36 = vld [vmem:[#allocation8 + $0x30] ss:$8 sps:$4 sm:$0xff]   ;;  %v1345_v38 = vld [vmem:[#allocation8 + $0x24] ss:$8 sps:$4 sm:$0xff]  }
  0x5b   :  { %v1340_v37 = vld [vmem:[#allocation8 + $0x130] ss:$8 sps:$4 sm:$0xff]   ;;  %v1348_v39 = vld [vmem:[#allocation8 + $0x124] ss:$8 sps:$4 sm:$0xff]   ;;  %v1343_v40 = vld [vmem:[#allocation8 + $0x20] ss:$8 sps:$4 sm:$0xff]  }
  0x5c   :  { %v1346_v41 = vld [vmem:[#allocation8 + $0x120] ss:$8 sps:$4 sm:$0xff]   ;;  %v1351_v42 = vld [vmem:[#allocation8 + $0x14] ss:$8 sps:$4 sm:$0xff]   ;;  %v1349_v44 = vld [vmem:[#allocation8 + $0x10] ss:$8 sps:$4 sm:$0xff]  }
  0x5d   :  { %250 = vmatpush1.bf16.msra.mxu0 %v1311_v15  ;;  %291 = vmatpush1.bf16.msra.mxu1 %v1312_v16  ;;  %v1354_v43 = vld [vmem:[#allocation8 + $0x114] ss:$8 sps:$4 sm:$0xff]   ;;  %v1352_v45 = vld [vmem:[#allocation8 + $0x110] ss:$8 sps:$4 sm:$0xff]   ;;  %v1357_v46 = vld [vmem:[#allocation8 + $0x4] ss:$8 sps:$4 sm:$0xff]  }
  0x5e   :  { %721 = vmatprep.subr.bf16.mxu0 %v1315_v17  ;;  %762 = vmatprep.subr.bf16.mxu1 %v1318_v18  ;;  %v1360_v47 = vld [vmem:[#allocation8 + $0x104] ss:$8 sps:$4 sm:$0xff]   ;;  %v1355_v48 = vld [vmem:[#allocation8] ss:$8 sps:$4 sm:$0xff]   ;;  %v1363_v50 = vld [vmem:[#allocation8 + $0xf4] ss:$8 sps:$4 sm:$0xff]  }
  0x5f   :  { %v1358_v49 = vld [vmem:[#allocation8 + $0x100] ss:$8 sps:$4 sm:$0xff]   ;;  %v1366_v51 = vld [vmem:[#allocation8 + $0x1f4] ss:$8 sps:$4 sm:$0xff]   ;;  %v1361_v52 = vld [vmem:[#allocation8 + $0xf0] ss:$8 sps:$4 sm:$0xff]  }
  0x60   :  { %1130 = vmatmul.mubr.msk.bf16.vlgmr.msra.gmra.mxu0 %vm231_vm0, %v112_v19  ;;  %1131 = vmatmul.mubr.msk.bf16.vlgmr.msra.gmra.mxu1 %vm231_vm0, %v112_v19  ;;  %v1364_v53 = vld [vmem:[#allocation8 + $0x1f0] ss:$8 sps:$4 sm:$0xff]   ;;  %v1369_v54 = vld [vmem:[#allocation8 + $0xe4] ss:$8 sps:$4 sm:$0xff]   ;;  %v1367_v56 = vld [vmem:[#allocation8 + $0xe0] ss:$8 sps:$4 sm:$0xff]   ;;  %v131_v19 = vlaneseq }
  0x61   :  { %722 = vmatpush1.bf16.msra.mxu0 %v1313_v20  ;;  %763 = vmatpush1.bf16.msra.mxu1 %v1316_v21  ;;  %v1372_v55 = vld [vmem:[#allocation8 + $0x1e4] ss:$8 sps:$4 sm:$0xff]   ;;  %v1370_v57 = vld [vmem:[#allocation8 + $0x1e0] ss:$8 sps:$4 sm:$0xff]   ;;  %v1375_v58 = vld [vmem:[#allocation8 + $0xd4] ss:$8 sps:$4 sm:$0xff]  }
  0x62   :  { %723 = vmatprep.subr.bf16.mxu0 %v1321_v22  ;;  %764 = vmatprep.subr.bf16.mxu1 %v1324_v23  ;;  %v1378_v59 = vld [vmem:[#allocation8 + $0x1d4] ss:$8 sps:$4 sm:$0xff]   ;;  %v1373_v60 = vld [vmem:[#allocation8 + $0xd0] ss:$8 sps:$4 sm:$0xff]   ;;  %v1381_v62 = vld [vmem:[#allocation8 + $0xc4] ss:$8 sps:$4 sm:$0xff]  }
  0x63   :  { %v1376_v61 = vld [vmem:[#allocation8 + $0x1d0] ss:$8 sps:$4 sm:$0xff]   ;;  %v1384_v63 = vld [vmem:[#allocation8 + $0x1c4] ss:$8 sps:$4 sm:$0xff]   ;;  %v1379_v0 = vld [vmem:[#allocation8 + $0xc0] ss:$8 sps:$4 sm:$0xff]  }
  0x64   :  { %v1382_v1 = vld [vmem:[#allocation8 + $0x1c0] ss:$8 sps:$4 sm:$0xff]   ;;  %v1387_v2 = vld [vmem:[#allocation8 + $0xb4] ss:$8 sps:$4 sm:$0xff]   ;;  %v1385_v4 = vld [vmem:[#allocation8 + $0xb0] ss:$8 sps:$4 sm:$0xff]  }
  0x65   :  { %724 = vmatpush1.bf16.msra.mxu0 %v1319_v24  ;;  %765 = vmatpush1.bf16.msra.mxu1 %v1322_v25  ;;  %v1390_v3 = vld [vmem:[#allocation8 + $0x1b4] ss:$8 sps:$4 sm:$0xff]   ;;  %v1388_v5 = vld [vmem:[#allocation8 + $0x1b0] ss:$8 sps:$4 sm:$0xff]   ;;  %v1393_v6 = vld [vmem:[#allocation8 + $0xa4] ss:$8 sps:$4 sm:$0xff]  }
  0x66   :  { %725 = vmatprep.subr.bf16.mxu0 %v1327_v26  ;;  %766 = vmatprep.subr.bf16.mxu1 %v1330_v27  ;;  %v1396_v7 = vld [vmem:[#allocation8 + $0x1a4] ss:$8 sps:$4 sm:$0xff]   ;;  %v1391_v8 = vld [vmem:[#allocation8 + $0xa0] ss:$8 sps:$4 sm:$0xff]   ;;  %v1399_v10 = vld [vmem:[#allocation8 + $0x94] ss:$8 sps:$4 sm:$0xff]  }
  0x67   :  { %v1394_v9 = vld [vmem:[#allocation8 + $0x1a0] ss:$8 sps:$4 sm:$0xff]   ;;  %v1402_v11 = vld [vmem:[#allocation8 + $0x194] ss:$8 sps:$4 sm:$0xff]   ;;  %v1397_v12 = vld [vmem:[#allocation8 + $0x90] ss:$8 sps:$4 sm:$0xff]  }
  0x68   :  { %v1400_v13 = vld [vmem:[#allocation8 + $0x190] ss:$8 sps:$4 sm:$0xff]   ;;  %v1405_v14 = vld [vmem:[#allocation8 + $0x84] ss:$8 sps:$4 sm:$0xff]   ;;  %v1403_v16 = vld [vmem:[#allocation8 + $0x80] ss:$8 sps:$4 sm:$0xff]  }
  0x69   :  { %726 = vmatpush1.bf16.msra.mxu0 %v1325_v28  ;;  %767 = vmatpush1.bf16.msra.mxu1 %v1328_v29  ;;  %v1408_v15 = vld [vmem:[#allocation8 + $0x184] ss:$8 sps:$4 sm:$0xff]   ;;  %v1406_v17 = vld [vmem:[#allocation8 + $0x180] ss:$8 sps:$4 sm:$0xff]   ;;  %v1409_v18 = vld [vmem:[#allocation10 + $0x78] sm:$0xff]   ;;  %v1667_v20 = vshrl.u32 %v131_v19, 7 }
  0x6a   :  { %727 = vmatprep.subr.bf16.mxu0 %v1333_v30  ;;  %768 = vmatprep.subr.bf16.mxu1 %v1336_v31  ;;  %v129_v23 = vld [vmem:[#allocation7] sm:$0xf]  ;;  %vm1597_vm1 = vmmov 0   ;;  %s1598_s23 = smov [#allocation13]  }
  0x6b   :  { %v133_v21 = vsub.s32 0, %v1667_v20  ;;  %v141_v22 = vsub.s32 2, %v1667_v20  ;;  %v137_v24 = vsub.s32 1, %v1667_v20  ;;  %v145_v25 = vsub.s32 3, %v1667_v20  ;;  %v1430_v20 = vld [vmem:[#allocation11 + $0x10] sm:$0xff]   ;;  %s1102_s24 = sshll.u32 %s1598_s23, 4  ;;  %s1103_s24 = int_to_ptr.vmem [resolvable:$true] %s1102_s24 }
  0x6c   :  { %p1558_p3 = scmp.lt.s32.totalorder %s1103_s24, %s1103_s24 }
  0x6d   :  { %728 = vmatpush1.bf16.msra.mxu0 %v1331_v32  ;;  %769 = vmatpush1.bf16.msra.mxu1 %v1334_v33  ;;  %v134_v26 = vrot.slane %v129_v23, %v133_v21  ;;  %v142_v27 = vrot.slane %v129_v23, %v141_v22  ;;  %v138_v28 = vrot.slane %v129_v23, %v137_v24 }
  0x6e   :  { %729 = vmatprep.subr.bf16.mxu0 %v1339_v34  ;;  %770 = vmatprep.subr.bf16.mxu1 %v1342_v35  ;;  %v146_v29 = vrot.slane %v129_v23, %v145_v25 }
  0x71   :  { %730 = vmatpush1.bf16.msra.mxu0 %v1337_v36  ;;  %771 = vmatpush1.bf16.msra.mxu1 %v1340_v37 }
  0x72   :  { %731 = vmatprep.subr.bf16.mxu0 %v1345_v38  ;;  %772 = vmatprep.subr.bf16.mxu1 %v1348_v39 }
  0x75   :  { %732 = vmatpush1.bf16.msra.mxu0 %v1343_v40  ;;  %773 = vmatpush1.bf16.msra.mxu1 %v1346_v41 }
  0x76   :  { %733 = vmatprep.subr.bf16.mxu0 %v1351_v42  ;;  %774 = vmatprep.subr.bf16.mxu1 %v1354_v43 }
  0x79   :  { %734 = vmatpush1.bf16.msra.mxu0 %v1349_v44  ;;  %775 = vmatpush1.bf16.msra.mxu1 %v1352_v45 }
  0x7a   :  { %735 = vmatprep.subr.bf16.mxu0 %v1357_v46  ;;  %776 = vmatprep.subr.bf16.mxu1 %v1360_v47 }
  0x7d   :  { %736 = vmatpush1.bf16.msra.mxu0 %v1355_v48  ;;  %777 = vmatpush1.bf16.msra.mxu1 %v1358_v49  ;;  %v1410_v49 = vld [vmem:[#allocation10 + $0x38] sm:$0xff]  }
  0x7e   :  { %737 = vmatprep.subr.bf16.mxu0 %v1363_v50  ;;  %778 = vmatprep.subr.bf16.mxu1 %v1366_v51  ;;  %v1411_v51 = vld [vmem:[#allocation10 + $0x70] sm:$0xff]  }
  0x81   :  { %738 = vmatpush2.bf16.msra.mxu0 %v1361_v52  ;;  %779 = vmatpush2.bf16.msra.mxu1 %v1364_v53  ;;  %v1412_v52 = vld [vmem:[#allocation10 + $0x30] sm:$0xff]   ;;  %v1413_v53 = vld [vmem:[#allocation10 + $0x68] sm:$0xff]  }
  0x82   :  { %739 = vmatprep.subr.bf16.mxu0 %v1369_v54  ;;  %780 = vmatprep.subr.bf16.mxu1 %v1372_v55  ;;  %v1414_v54 = vld [vmem:[#allocation10 + $0x28] sm:$0xff]   ;;  %v1415_v55 = vld [vmem:[#allocation10 + $0x60] sm:$0xff]  }
  0x85   :  { %740 = vmatpush2.bf16.msra.mxu0 %v1367_v56  ;;  %781 = vmatpush2.bf16.msra.mxu1 %v1370_v57  ;;  %v1416_v56 = vld [vmem:[#allocation10 + $0x20] sm:$0xff]   ;;  %v1417_v57 = vld [vmem:[#allocation10 + $0x58] sm:$0xff]  }
  0x86   :  { %741 = vmatprep.subr.bf16.mxu0 %v1375_v58  ;;  %782 = vmatprep.subr.bf16.mxu1 %v1378_v59  ;;  %v1418_v58 = vld [vmem:[#allocation10 + $0x18] sm:$0xff]   ;;  %v1419_v59 = vld [vmem:[#allocation10 + $0x50] sm:$0xff]  }
  0x89   :  { %742 = vmatpush2.bf16.msra.mxu0 %v1373_v60  ;;  %783 = vmatpush2.bf16.msra.mxu1 %v1376_v61  ;;  %v1420_v60 = vld [vmem:[#allocation10 + $0x10] sm:$0xff]   ;;  %v1421_v61 = vld [vmem:[#allocation10 + $0x48] sm:$0xff]  }
  0x8a   :  { %743 = vmatprep.subr.bf16.mxu0 %v1381_v62  ;;  %784 = vmatprep.subr.bf16.mxu1 %v1384_v63  ;;  %v1422_v62 = vld [vmem:[#allocation10 + $0x8] sm:$0xff]   ;;  %v1423_v63 = vld [vmem:[#allocation10 + $0x40] sm:$0xff]  }
  0x8d   :  { %744 = vmatpush2.bf16.msra.mxu0 %v1379_v0  ;;  %785 = vmatpush2.bf16.msra.mxu1 %v1382_v1  ;;  %v1424_v0 = vld [vmem:[#allocation10] sm:$0xff]   ;;  %v1425_v1 = vld [vmem:[#allocation11 + $0x38] sm:$0xff]  }
  0x8e   :  { %745 = vmatprep.subr.bf16.mxu0 %v1387_v2  ;;  %786 = vmatprep.subr.bf16.mxu1 %v1390_v3  ;;  %v1596_v2 = vmov 0.0   ;;  %v1426_v3 = vld [vmem:[#allocation11 + $0x30] sm:$0xff]  }
  0x91   :  { %746 = vmatpush2.bf16.msra.mxu0 %v1385_v4  ;;  %787 = vmatpush2.bf16.msra.mxu1 %v1388_v5  ;;  %v1427_v4 = vld [vmem:[#allocation11 + $0x28] sm:$0xff]   ;;  %v1428_v5 = vld [vmem:[#allocation11 + $0x20] sm:$0xff]  }
  0x92   :  { %747 = vmatprep.subr.bf16.mxu0 %v1393_v6  ;;  %788 = vmatprep.subr.bf16.mxu1 %v1396_v7  ;;  %v1429_v6 = vld [vmem:[#allocation11 + $0x18] sm:$0xff]  }
  0x93   :  { %v389_v7 = vld [vmem:[%s1697_s4] sm:$0x3] }
  0x95   :  { %748 = vmatpush2.bf16.msra.mxu0 %v1391_v8  ;;  %789 = vmatpush2.bf16.msra.mxu1 %v1394_v9  ;;  %v394_v8 = vrot.slane %v389_v7, %v133_v21  ;;  %v398_v9 = vrot.slane %v389_v7, %v137_v24  ;;  %v1431_v21 = vld [vmem:[#allocation11 + $0x8] sm:$0xff]   ;;  %v1432_v24 = vld [vmem:[#allocation11] sm:$0xff]  }
  0x96   :  { %749 = vmatprep.subr.bf16.mxu0 %v1399_v10  ;;  %790 = vmatprep.subr.bf16.mxu1 %v1402_v11 }
  0x99   :  { %750 = vmatpush2.bf16.msra.mxu0 %v1397_v12  ;;  %791 = vmatpush2.bf16.msra.mxu1 %v1400_v13 }
  0x9a   :  { %751 = vmatprep.subr.bf16.mxu0 %v1405_v14  ;;  %792 = vmatprep.subr.bf16.mxu1 %v1408_v15 }
  0x9d   :  { %752 = vmatpush2.bf16.msra.mxu0 %v1403_v16  ;;  %793 = vmatpush2.bf16.msra.mxu1 %v1406_v17 }
  0x9e   :  { %1222 = vmatprep.subr.bf16.mxu0 %v1409_v18  ;;  %1253 = vmatprep.subr.bf16.mxu1 %v1596_v2 }
 0x120   :  { %v269_v30 = vpop.f32.mrf.mxu0  ;;  %v310_v31 = vpop.f32.mrf.mxu1 }
 0x121   :  { %v270_v32 = vadd.f32 %v269_v30, %v134_v26  ;;  %v311_v33 = vadd.f32 %v310_v31, %v142_v27  ;;  %v1196_v30 = vld [vmem:[%s1699_s6] ss:$0 sm:$0xff]  ;;  %s1553_s6 = scalar_lea.vmem %s1103_s24, 128 }
 0x122   :  { %v271_v34 = vpop.f32.mrf.mxu0  ;;  %v312_v35 = vpop.f32.mrf.mxu1  ;;  %p1554_p2 = scmp.ne.s32.totalorder %s1103_s24, %s1553_s6  ;;  %p1559_p4 = scmp.lt.s32.totalorder %s1553_s6, %s1553_s6 }
 0x123   :  { %v319_v36 = vmax.f32 %v311_v33, 0.0  ;;  %v272_v37 = vadd.f32 %v271_v34, %v138_v28  ;;  %v313_v38 = vadd.f32 %v312_v35, %v146_v29  ;;  %v317_v39 = vmax.f32 %v270_v32, 0.0 }
 0x124   :  { %v273_v40 = vpop.f32.mrf.mxu0  ;;  %v314_v41 = vpop.f32.mrf.mxu1  ;;  %p1560_p5 = por %p1559_p4, %p1558_p3 }
 0x125   :  { %v318_v42 = vmax.f32 %v272_v37, 0.0  ;;  %v320_v43 = vmax.f32 %v313_v38, 0.0  ;;  %v323_v44 = vpack.c.bf16 %v319_v36, %v319_v36  ;;  %v321_v50 = vpack.c.bf16 %v317_v39, %v317_v39  ;;  %v1213_v38 = vld [vmem:[%s1701_s8] ss:$0 sm:$0xff] }
 0x126   :  { %v274_v45 = vpop.f32.mrf.mxu0  ;;  %v315_v46 = vpop.f32.mrf.mxu1  ;;  %p1561_p6 = pnand %p1560_p5, %p1554_p2 }
 0x127   :  { %v322_v47 = vpack.c.bf16 %v318_v42, %v318_v42  ;;  %v324_v48 = vpack.c.bf16 %v320_v43, %v320_v43 }
 0x129   :  { %753 = vmatprep.mubr.bf16.mxu0 %v322_v47  ;;  %794 = vmatprep.mubr.bf16.mxu1 %v324_v48 }
 0x12a   :  { %754 = vmatmul.mubr.bf16.vlgmr.msra.gmra.mxu0 %v321_v50  ;;  %795 = vmatmul.mubr.bf16.vlgmr.msra.gmra.mxu1 %v323_v44 }
 0x12b   :  { %1223 = vmatpush3.bf16.msra.mxu0 %v1410_v49  ;;  %1254 = vmatpush3.bf16.msra.mxu1 %v1425_v1 }
 0x12c   :  { %1224 = vmatprep.subr.bf16.mxu0 %v1411_v51  ;;  %1255 = vmatprep.subr.bf16.mxu1 %v1596_v2 }
 0x12d   :  { %1269 = vmatprep.mubr.msk.bf16.mxu1 %vm1597_vm1, %v1596_v2 }
 0x12f   :  { %1225 = vmatpush3.bf16.msra.mxu0 %v1412_v52  ;;  %1256 = vmatpush3.bf16.msra.mxu1 %v1426_v3 }
 0x130   :  { %1226 = vmatprep.subr.bf16.mxu0 %v1413_v53  ;;  %1257 = vmatprep.subr.bf16.mxu1 %v1596_v2 }
 0x133   :  { %1227 = vmatpush3.bf16.msra.mxu0 %v1414_v54  ;;  %1258 = vmatpush3.bf16.msra.mxu1 %v1427_v4 }
 0x134   :  { %1228 = vmatprep.subr.bf16.mxu0 %v1415_v55  ;;  %1259 = vmatprep.subr.bf16.mxu1 %v1596_v2 }
 0x137   :  { %1229 = vmatpush3.bf16.msra.mxu0 %v1416_v56  ;;  %1260 = vmatpush3.bf16.msra.mxu1 %v1428_v5 }
 0x138   :  { %1230 = vmatprep.subr.bf16.mxu0 %v1417_v57  ;;  %1261 = vmatprep.subr.bf16.mxu1 %v1596_v2 }
 0x13b   :  { %1231 = vmatpush3.bf16.msra.mxu0 %v1418_v58  ;;  %1262 = vmatpush3.bf16.msra.mxu1 %v1429_v6 }
 0x13c   :  { %1232 = vmatprep.subr.bf16.mxu0 %v1419_v59  ;;  %1263 = vmatprep.subr.bf16.mxu1 %v1596_v2 }
 0x13f   :  { %1233 = vmatpush3.bf16.msra.mxu0 %v1420_v60  ;;  %1264 = vmatpush3.bf16.msra.mxu1 %v1430_v20 }
 0x140   :  { %1234 = vmatprep.subr.bf16.mxu0 %v1421_v61  ;;  %1265 = vmatprep.subr.bf16.mxu1 %v1596_v2 }
 0x143   :  { %1235 = vmatpush3.bf16.msra.mxu0 %v1422_v62  ;;  %1266 = vmatpush3.bf16.msra.mxu1 %v1431_v21 }
 0x144   :  { %1236 = vmatprep.subr.bf16.mxu0 %v1423_v63  ;;  %1267 = vmatprep.subr.bf16.mxu1 %v1596_v2 }
 0x147   :  { %1237 = vmatpush3.bf16.msra.mxu0 %v1424_v0  ;;  %1268 = vmatpush3.bf16.msra.mxu1 %v1432_v24 }
 0x1ea   :  { %v755_v10 = vpop.f32.mrf.mxu0  ;;  %v796_v11 = vpop.f32.mrf.mxu1 }
 0x1eb   :  { %v756_v12 = vadd.f32 %v755_v10, %v394_v8 }
 0x1ec   :  { %v757_v13 = vpop.f32.mrf.mxu0  ;;  %v798_v14 = vpop.f32.mrf.mxu1 }
 0x1ed   :  { %v797_v15 = vadd.f32 %v796_v11, %v756_v12  ;;  %v758_v16 = vadd.f32 %v757_v13, %v398_v9 }
 0x1ee   :  { %v759_v17 = vpop.f32.mrf.mxu0  ;;  %v800_v18 = vpop.f32.mrf.mxu1 }
 0x1ef   :  { %v799_v19 = vadd.f32 %v798_v14, %v758_v16  ;;  %v803_v22 = vmax.f32 %v797_v15, 0.0 }
 0x1f0   :  { %v760_v23 = vpop.f32.mrf.mxu0  ;;  %v801_v25 = vpop.f32.mrf.mxu1 }
 0x1f1   :  { %v804_v26 = vmax.f32 %v799_v19, 0.0  ;;  %v805_v28 = vpack.c.bf16 %v803_v22, %v803_v22 }
 0x1f3   :  { %v806_v27 = vpack.c.bf16 %v804_v26, %v804_v26 }
 0x1f5   :  { %974 = vmatprep.mubr.bf16.mxu0 %v806_v27 }
 0x1f6   :  { %975 = vmatmul.mubr.bf16.vlgmr.msra.gmra.mxu0 %v805_v28 }
 0x2b6   :  { %v1238_v29 = vpop.f32.mrf.mxu0 }
 0x2b8   :  { %v1239_v31 = vpop.f32.mrf.mxu0 }
 0x2b9   :  { %v1240_v32 = vadd.f32 %v1239_v31, %v1238_v29 }
 0x2ba   :  { %v1241_v33 = vpop.f32.mrf.mxu0 }
 0x2bb   :  { %v977_v34 = vadd.f32 %v1240_v32, %v1196_v30 }
 0x2bc   :  { %v1242_v35 = vpop.f32.mrf.mxu0 }
 0x2bd   :  { %v982_v36 = vmax.f32 %v977_v34, 0.0 }
 0x2bf   :  { %v983_v37 = vpack.c.bf16 %v982_v36, %v982_v36 }
 0x2c1   :  { %1270 = vmatmul.mubr.bf16.vlgmr.msra.gmra.mxu1 %v983_v37 }
 0x381   :  { %v1089_v39 = vpop.f32.mrf.mxu1 }
 0x382   :  { %v1090_v40 = vadd.f32 %v1213_v38, %v1089_v39 }
 0x383   :  { %v1271_v41 = vpop.f32.mrf.mxu1 }
 0x384   :  { %1095 = vst [vmem:[#allocation13] sm:$0xff] %v1090_v40 }
 0x385   :  { %v1092_v42 = vpop.f32.mrf.mxu1 }
 0x386   :  { %1564 = shalt.err (!%p1561_p6)
}
 0x387   :  { %1105 = dma.vmem_to_hbm [thread:$0]  %s1103_s24, 128, %s1702_s9, [#allocation4]   ;;  %v1272_v43 = vpop.f32.mrf.mxu1 }
 0x388   :  { %1581 = dma.done.wait [#allocation4], 128  }
 0x389   :  { %1582 = vsyncadd [#allocation4], 4294967168 }
 0x38a   :  { %1109 = vsyncpa [#allocation3], 1 }
 0x38b   :  { %1110 = vsyncpa [#allocation6], 1 }
 0x38c   :  { %1111 = vsyncpa [#allocation9], 1 }
 0x38d   :  { %1112 = vsyncpa [#allocation12], 1 }
 0x38e   :  { %1113 = vsyncpa [#allocation4], 1 }

</bundles_post_ra>
